<compile_context>
chip_gen: v5e
topology: v5e:2x2
jax: 0.10.0
libtpu: 0.0.40
codegen_flags: <defaults>
</compile_context>

<pallas_src>
import math
from typing import NamedTuple

import jax
import jax.numpy as jnp
from jax.experimental import pallas as pl
from jax.experimental.pallas import tpu as pltpu


_LANE = 128
_SUBLANE = 8
# Below this many elements the Pallas launch / reshape overhead exceeds the
# sub-microsecond compute; fall back to plain jax.nn.softplus.
_PALLAS_MIN_ELEMS = _SUBLANE * _LANE  # 1024
# Max rows per block: 2048 x 128 x 4B = 1 MiB tile; 2 streams x 2 buffers = 4 MiB
# of VMEM -> comfortably inside every generation's scoped VMEM (incl. v7x).
_MAX_BLOCK_ROWS = 2048


# ----------------------------------------------------------------------------
# Pallas kernel: elementwise numerically-stable softplus on the pre-scale.
# ----------------------------------------------------------------------------
def _softplus_kernel(spi_ref, scale_ref):
    # softplus(x) = log(1 + exp(x)); stable form: max(x, 0) + log1p(exp(-|x|)).
    # Compute in f32 (v5e has no bf16 VPU/EUP); store back in the I/O dtype.
    x = spi_ref[...].astype(jnp.float32)
    sp = jnp.maximum(x, 0.0) + jnp.log1p(jnp.exp(-jnp.abs(x)))
    scale_ref[...] = sp.astype(scale_ref.dtype)


def _softplus_pallas(spi_scale: jax.Array) -> jax.Array:
    """Elementwise softplus via a lane-dense Pallas kernel (HBM-bound path)."""
    orig_shape = spi_scale.shape
    dtype = spi_scale.dtype
    total = spi_scale.size

    if total < _PALLAS_MIN_ELEMS:
        # Kernel launch overhead dwarfs the compute for tiny tensors.
        return jax.nn.softplus(spi_scale.astype(jnp.float32)).astype(dtype)

    flat = spi_scale.reshape(-1)
    rows = pl.cdiv(total, _LANE)
    tm = min(_MAX_BLOCK_ROWS, pl.cdiv(rows, _SUBLANE) * _SUBLANE)
    rows_padded = pl.cdiv(rows, tm) * tm
    padded_total = rows_padded * _LANE

    if padded_total != total:
        flat = jnp.pad(flat, (0, padded_total - total))
    slab = flat.reshape(rows_padded, _LANE)  # lane-dense 2-D slab

    spec = pl.BlockSpec((tm, _LANE), lambda i: (i, 0))
    out = pl.pallas_call(
        _softplus_kernel,
        out_shape=jax.ShapeDtypeStruct((rows_padded, _LANE), dtype),
        grid_spec=pl.GridSpec(
            grid=(rows_padded // tm,),
            in_specs=[spec],
            out_specs=spec,
        ),
        compiler_params=pltpu.CompilerParams(
            dimension_semantics=("parallel",)),
    )(slab)

    out = out.reshape(-1)
    if padded_total != total:
        out = out[:total]
    return out.reshape(orig_shape)


# ----------------------------------------------------------------------------
# Thin "distribution" wrapper mimicking torch.distributions.Normal.
# ----------------------------------------------------------------------------
class NormalParams(NamedTuple):
    loc: jax.Array
    scale: jax.Array

    def log_prob(self, value):
        # Upcast to f32 so bf16-held parameters do not lose precision here.
        loc = jnp.asarray(self.loc, jnp.float32)
        scale = jnp.asarray(self.scale, jnp.float32)
        value = jnp.asarray(value, jnp.float32)
        var = scale ** 2
        return (-((value - loc) ** 2) / (2.0 * var)
                - jnp.log(scale) - 0.5 * math.log(2.0 * math.pi))


def _softplus_inverse(y: float) -> float:
    # log(exp(y) - 1), matching the PyTorch init of var_spi_scale
    return math.log(math.exp(y) - 1.0)


class GaussianLikelihood:
    """JAX/Pallas port of bal.layers.GaussianLikelihood (forward only)."""

    def __init__(self, scale="heteroscedastic"):
        self.scale = scale
        if scale == "homoscedastic":
            self.var_spi_scale = jnp.asarray(_softplus_inverse(1.0), jnp.float32)
        elif scale == "heteroscedastic":
            self.var_spi_scale = None
        else:
            self.var_spi_scale = jnp.asarray(_softplus_inverse(float(scale)), jnp.float32)

    def __call__(self, *inputs) -> NormalParams:
        loc = inputs[0]
        if self.scale == "heteroscedastic":
            spi_scale = inputs[1]
            if spi_scale.shape != loc.shape:
                # torch Normal allows loc/scale broadcasting; keep that semantics
                # but skip the Pallas path for the mismatched-shape corner case.
                scale_out = jax.nn.softplus(spi_scale)
            else:
                scale_out = _softplus_pallas(spi_scale)
        else:
            # Scalar pre-scale: softplus once outside Pallas, broadcast lazily.
            scalar = jax.nn.softplus(self.var_spi_scale)
            scale_out = jnp.broadcast_to(scalar, loc.shape).astype(loc.dtype)
        # loc is passed through untouched (no HBM round-trip through the kernel).
        return NormalParams(loc=loc, scale=scale_out)


if __name__ == "__main__":
    key = jax.random.PRNGKey(0)
    k1, k2, k3, k4 = jax.random.split(key, 4)

    # NCHW inputs, as produced by a conv head: (batch=2, channels=4, H=16, W=16)
    loc = jax.random.normal(k1, (2, 4, 16, 16), dtype=jnp.float32)
    spi_scale = jax.random.normal(k2, (2, 4, 16, 16), dtype=jnp.float32)

    # heteroscedastic mode: per-pixel scale predicted by the network (Pallas path)
    lik_het = GaussianLikelihood(scale="heteroscedastic")(loc, spi_scale)
    jax.block_until_ready(lik_het.loc)
    jax.block_until_ready(lik_het.scale)

    # homoscedastic mode: single learnable scalar pre-scale (no kernel needed)
    lik_hom = GaussianLikelihood(scale="homoscedastic")(loc)
    jax.block_until_ready(lik_hom.scale)

    # non-tile-aligned shape exercises the padding path: (2, 3, 16, 16) = 1536 elems
    loc_b = jax.random.normal(k3, (2, 3, 16, 16), dtype=jnp.float32)
    spi_b = jax.random.normal(k4, (2, 3, 16, 16), dtype=jnp.float32)
    lik_pad = GaussianLikelihood(scale="heteroscedastic")(loc_b, spi_b)
    jax.block_until_ready(lik_pad.scale)

    # correctness checks vs pure-JAX reference
    assert jnp.allclose(lik_het.loc, loc, atol=1e-6)
    assert jnp.allclose(lik_het.scale, jax.nn.softplus(spi_scale), atol=1e-6)
    assert jnp.allclose(lik_hom.scale, jnp.ones_like(loc), atol=1e-6)  # softplus(softplus^-1(1)) == 1
    assert jnp.allclose(lik_pad.scale, jax.nn.softplus(spi_b), atol=1e-6)

    print("KERNEL_OK")
</pallas_src>

<mosaic_0001>
module attributes {stable_mosaic.version = 11 : i64} {
  func.func @_softplus_kernel(%arg0: i32, %arg1: memref<16x128xf32, #tpu.memory_space<vmem>>, %arg2: memref<16x128xf32, #tpu.memory_space<vmem>>) attributes {dimension_semantics = [#tpu.dimension_semantics<parallel>], iteration_bounds = array<i64: 1>, scalar_prefetch = 0 : i64, scratch_operands = 0 : i64, tpu.core_type = #tpu.core_type<tc>, window_params = [{transform_indices = @transform_0, window_bounds = array<i64: 16, 128>}, {transform_indices = @transform_1, window_bounds = array<i64: 16, 128>}]} {
    %c0 = arith.constant 0 : index
    %c0_0 = arith.constant 0 : index
    %0 = vector.load %arg1[%c0, %c0_0] : memref<16x128xf32, #tpu.memory_space<vmem>>, vector<16x128xf32>
    %cst = arith.constant 0.000000e+00 : f32
    %1 = vector.broadcast %cst : f32 to vector<16x128xf32>
    %2 = arith.maximumf %0, %1 : vector<16x128xf32>
    %3 = math.absf %0 : vector<16x128xf32>
    %cst_1 = arith.constant 0.000000e+00 : f32
    %4 = vector.broadcast %cst_1 : f32 to vector<16x128xf32>
    %5 = arith.subf %4, %3 : vector<16x128xf32>
    %6 = math.exp %5 : vector<16x128xf32>
    %7 = math.log1p %6 : vector<16x128xf32>
    %8 = arith.addf %2, %7 : vector<16x128xf32>
    %c0_2 = arith.constant 0 : index
    %c0_3 = arith.constant 0 : index
    %9 = vector.load %arg2[%c0_2, %c0_3] : memref<16x128xf32, #tpu.memory_space<vmem>>, vector<16x128xf32>
    tpu.vector_store %arg2[%c0_2, %c0_3], %8 {strides = array<i32>} : memref<16x128xf32, #tpu.memory_space<vmem>>, vector<16x128xf32>,
    return
  }
  func.func @transform_0(%arg0: i32) -> (i32, i32) {
    %c0_i32 = arith.constant 0 : i32
    %c0_i32_0 = arith.constant 0 : i32
    return %arg0, %c0_i32 : i32, i32
  }
  func.func @transform_1(%arg0: i32) -> (i32, i32) {
    %c0_i32 = arith.constant 0 : i32
    %c0_i32_0 = arith.constant 0 : i32
    return %arg0, %c0_i32 : i32, i32
  }
}

</mosaic_0001>

<bundles_post_ra>
// kernel: tpu_custom_call.1
= control target key start
LH: loop header
LB: loop body
LE: loop exit
PB: predicated region body
PF: predicated region fallthrough
CT: control target
= control target key end

     0   :  { %6 = vsyncpa [#allocation3], 0  ;;  %s168_s0 = inlined_call_operand.hbm [shape: f32[16,128], index: 0, kind: input, shape index: {}]   ;;  %s169_s1 = inlined_call_operand.hbm [shape: f32[16,128], index: 1, kind: output, shape index: {}]  }
   0x1   :  { %7 = vsyncpa [#allocation4], 0  ;;  %s12_s8 = sshll.u32 %s168_s0, 4  ;;  %s142_s9 = smov [#allocation2]   ;;  %s13_s8 = int_to_ptr.hbm [resolvable:$true] %s12_s8 }
   0x2   :  { %s14_s10 = sshll.u32 %s142_s9, 4  ;;  %s143_s11 = smov 128   ;;  %s15_s10 = int_to_ptr.vmem [resolvable:$true] %s14_s10 }
   0x3   :  { %s144_s12 = smov 8  }
   0x4   :  { %20 = dma.hbm_to_vmem [thread:$0]  %s13_s8, 256, %s15_s10, [#allocation3], %s143_s11, %s143_s11, %s144_s12  }
   0x5   :  { %138 = dma.done.wait [#allocation3], 256  }
   0x6   :  { %139 = vsyncadd [#allocation3], 4294967040  ;;  %v25_v0 = vld [vmem:[#allocation2] sm:$0xff]  ;;  %v26_v1 = vld [vmem:[#allocation2 + $0x8] sm:$0xff]  ;;  %s145_s0 = smov [#allocation5]   ;;  %s65_s16 = sshll.u32 %s169_s1, 4  ;;  %s66_s16 = int_to_ptr.hbm [resolvable:$true] %s65_s16 }
   0x7   :  { %v29_v2 = vand.u32 2147483647, %v25_v0  ;;  %v30_v3 = vand.u32 2147483647, %v26_v1  ;;  %v27_v20 = vmax.f32 %v25_v0, 0.0  ;;  %v28_v24 = vmax.f32 %v26_v1, 0.0 }
   0x8   :  { %s63_s13 = sshll.u32 %s145_s0, 4  ;;  %s64_s13 = int_to_ptr.vmem [resolvable:$true] %s63_s13 }
   0x9   :  { %v31_v4 = vsub.f32 0.0, %v29_v2  ;;  %v32_v5 = vsub.f32 0.0, %v30_v3 }
   0xb   :  { %v33_v6 = vmul.f32 1.442695, %v31_v4  ;;  %v35_v7 = vmul.f32 1.442695, %v32_v5 }
   0xd   :  { %82 = vpow2.f32 %v33_v6 }
   0xe   :  { %84 = vpow2.f32 %v35_v7 }
  0x13   :  { %v83_v8 = vpop.eup %82 }
  0x14   :  { %v85_v9 = vpop.eup %84  ;;  %v37_v10 = vadd.f32 1.0, %v83_v8  ;;  %v40_v11 = vmul.f32 -0.5, %v83_v8  ;;  %v43_v15 = vand.u32 2147483647, %v83_v8 }
  0x15   :  { %v46_v12 = vadd.f32 1.0, %v85_v9  ;;  %v49_v13 = vmul.f32 -0.5, %v85_v9  ;;  %v52_v17 = vand.u32 2147483647, %v85_v9 }
  0x16   :  { %86 = vlog2.f32 %v37_v10  ;;  %v41_v14 = vadd.f32 1.0, %v40_v11  ;;  %vm44_vm0 = vcmp.lt.f32.partialorder %v43_v15, 0.0004427343 }
  0x17   :  { %88 = vlog2.f32 %v46_v12  ;;  %v50_v16 = vadd.f32 1.0, %v49_v13  ;;  %vm53_vm1 = vcmp.lt.f32.partialorder %v52_v17, 0.0004427343 }
  0x18   :  { %v42_v18 = vmul.f32 %v83_v8, %v41_v14 }
  0x19   :  { %v51_v21 = vmul.f32 %v85_v9, %v50_v16 }
  0x1c   :  { %v87_v19 = vpop.eup %86 }
  0x1d   :  { %v89_v22 = vpop.eup %88  ;;  %v39_v23 = vmul.f32 0.6931472, %v87_v19 }
  0x1e   :  { %v48_v25 = vmul.f32 0.6931472, %v89_v22 }
  0x1f   :  { %v45_v26 = vsel %vm44_vm0, %v42_v18, %v39_v23 }
  0x20   :  { %v55_v27 = vadd.f32 %v45_v26, %v27_v20  ;;  %v54_v28 = vsel %vm53_vm1, %v51_v21, %v48_v25 }
  0x21   :  { %v56_v29 = vadd.f32 %v54_v28, %v28_v24 }
  0x22   :  { %57 = vst [vmem:[#allocation5] sm:$0xff] %v55_v27 }
  0x23   :  { %58 = vst [vmem:[#allocation5 + $0x8] sm:$0xff] %v56_v29 }
  0x24   :  { %71 = dma.vmem_to_hbm [thread:$0]  %s64_s13, 256, %s66_s16, [#allocation4], %s143_s11, %s143_s11, %s144_s12  }
  0x25   :  { %140 = dma.done.wait [#allocation4], 256  }
  0x26   :  { %141 = vsyncadd [#allocation4], 4294967040 }
  0x27   :  { %76 = vsyncpa [#allocation3], 1 }
  0x28   :  { %77 = vsyncpa [#allocation4], 1 }

</bundles_post_ra>
